<compile_context>
chip_gen: v5e
topology: v5e:2x2
jax: 0.10.0
libtpu: 0.0.40
codegen_flags: <defaults>
</compile_context>

<pallas_src>
import jax
import jax.numpy as jnp
from jax.experimental import pallas as pl
from jax.experimental.pallas import tpu as pltpu


def _round_up(x, m):
    return ((x + m - 1) // m) * m


def _as_lane_dense_2d(t):
    """Metadata-only reshape of the contiguous buffer into a lane-dense 2-D slab."""
    if t.ndim == 2 and t.shape[-1] >= 128:
        return t
    total = t.size
    for w in (2048, 1024, 512, 256, 128):
        if total % w == 0:
            return t.reshape(total // w, w)
    if t.ndim == 2:
        return t  # narrow, non-divisible: fall back to masked stores
    return t.reshape(1, total)


def _make_static_kernel(theta_val):
    """Kernel with -1/theta folded in as a compile-time constant."""
    neg_inv_theta = -1.0 / theta_val
    if theta_val == 1.0:            # (1+t)^-1
        def kernel(t_ref, o_ref):
            x = t_ref[...].astype(jnp.float32)
            o_ref[...] = pl.reciprocal(1.0 + x, approx=False).astype(o_ref.dtype)
        return kernel, 1
    if theta_val == 2.0:            # (1+t)^-1/2
        def kernel(t_ref, o_ref):
            x = t_ref[...].astype(jnp.float32)
            o_ref[...] = jax.lax.rsqrt(1.0 + x).astype(o_ref.dtype)
        return kernel, 1
    if theta_val == -1.0:           # (1+t)^1
        def kernel(t_ref, o_ref):
            x = t_ref[...].astype(jnp.float32)
            o_ref[...] = (1.0 + x).astype(o_ref.dtype)
        return kernel, 0

    def kernel(t_ref, o_ref):
        x = t_ref[...].astype(jnp.float32)
        # (1+t)^(-1/theta) = 2^((-1/theta) * log2(1+t)); ln2 factors cancel.
        o_ref[...] = jnp.exp2(jnp.float32(neg_inv_theta) * jnp.log2(1.0 + x)).astype(o_ref.dtype)
    return kernel, 2


def _clayton_phi_kernel_dyn(a_ref, t_ref, o_ref):
    # a_ref: (1,) scalar (-1/theta) in SMEM; t_ref/o_ref: (bn, bd) VMEM tiles.
    a = a_ref[0]
    x = t_ref[...].astype(jnp.float32)
    o_ref[...] = jnp.exp2(a * jnp.log2(1.0 + x)).astype(o_ref.dtype)


def clayton_phi_forward(t, theta, *, block_n=1024, block_d=512):
    """Pallas TPU implementation of ClaytonPhi.forward: (1 + t) ** (-1 / theta).

    t may be any shape/float dtype (output preserves the dtype); theta is the
    nn.Parameter value (concrete host scalar or traced scalar).
    """
    t = jnp.asarray(t)
    orig_shape = t.shape
    out_dtype = t.dtype if jnp.issubdtype(t.dtype, jnp.floating) else jnp.float32

    t2d = _as_lane_dense_2d(t)
    n2, d2 = t2d.shape
    total = t2d.size

    # Blocks aligned to the (8, 128) vreg tiling; ragged edges come from the
    # pl.cdiv grid (OOB lanes read garbage through exp2/log2 - harmless for an
    # elementwise op; OOB stores are masked).  No pad/slice HBM passes.
    bn = min(block_n, _round_up(n2, 8))
    bd = min(block_d, _round_up(d2, 128))
    # v7x megacore: make sure at least one "parallel" axis has >= 2 blocks.
    if pl.cdiv(n2, bn) == 1 and pl.cdiv(d2, bd) == 1 and n2 >= 16:
        bn = max(8, _round_up(pl.cdiv(n2, 2), 8))
    grid = (pl.cdiv(n2, bn), pl.cdiv(d2, bd))

    block_spec = pl.BlockSpec((bn, bd), lambda i, j: (i, j))
    compiler_params = pltpu.CompilerParams(
        dimension_semantics=("parallel", "parallel"))
    io_bytes = total * (t2d.dtype.itemsize + jnp.dtype(out_dtype).itemsize)

    # Specialize when theta is a concrete host value (fold -1/theta into the
    # kernel; single transcendental for theta in {1, 2}).
    theta_static = None
    try:
        theta_static = float(theta)
    except Exception:  # traced theta (e.g. parameter under jit)
        theta_static = None

    if theta_static is not None:
        kernel, n_trans = _make_static_kernel(theta_static)
        out2d = pl.pallas_call(
            kernel,
            out_shape=jax.ShapeDtypeStruct((n2, d2), out_dtype),
            grid=grid,
            in_specs=[block_spec],
            out_specs=block_spec,
            compiler_params=compiler_params,
            cost_estimate=pl.CostEstimate(
                flops=2 * total,
                transcendentals=n_trans * total,
                bytes_accessed=io_bytes),
        )(t2d)
    else:
        neg_inv_theta = (-1.0 / jnp.asarray(theta, jnp.float32)).reshape((1,))
        out2d = pl.pallas_call(
            _clayton_phi_kernel_dyn,
            out_shape=jax.ShapeDtypeStruct((n2, d2), out_dtype),
            grid=grid,
            in_specs=[
                pl.BlockSpec(memory_space=pltpu.SMEM),   # (1,) -1/theta scalar
                block_spec,
            ],
            out_specs=block_spec,
            compiler_params=compiler_params,
            cost_estimate=pl.CostEstimate(
                flops=2 * total,
                transcendentals=2 * total,
                bytes_accessed=io_bytes),
        )(neg_inv_theta, t2d)

    return out2d.reshape(orig_shape)


if __name__ == "__main__":
    key = jax.random.PRNGKey(0)

    # 1) Concrete theta = 2.0 -> rsqrt specialization, (n, ndims) shaped input.
    theta = 2.0
    N, D = 16, 128
    t = jax.random.uniform(key, (N, D), dtype=jnp.float32, minval=0.0, maxval=4.0)
    out = jax.block_until_ready(clayton_phi_forward(t, theta))
    ref = (1.0 + t) ** (-1.0 / theta)
    assert out.shape == ref.shape and out.dtype == ref.dtype
    assert jnp.allclose(out, ref, rtol=1e-5, atol=1e-6), "mismatch (theta=2)"

    # 2) General theta (exp2/log2 path) + non-divisible shape (ragged blocks).
    theta2 = 3.0
    t2 = jax.random.uniform(jax.random.PRNGKey(1), (37, 200),
                            dtype=jnp.float32, minval=0.0, maxval=4.0)
    out2 = jax.block_until_ready(clayton_phi_forward(t2, theta2))
    ref2 = (1.0 + t2) ** (-1.0 / theta2)
    assert jnp.allclose(out2, ref2, rtol=1e-5, atol=1e-6), "mismatch (ragged)"

    # 3) Narrow last dim -> lane-dense reshape path; bf16 in, bf16 out.
    t3 = jax.random.uniform(jax.random.PRNGKey(2), (64, 16),
                            dtype=jnp.bfloat16, minval=0.0, maxval=4.0)
    out3 = jax.block_until_ready(clayton_phi_forward(t3, theta2))
    assert out3.shape == t3.shape and out3.dtype == jnp.bfloat16
    ref3 = (1.0 + t3.astype(jnp.float32)) ** (-1.0 / theta2)
    assert jnp.allclose(out3.astype(jnp.float32), ref3, rtol=2e-2, atol=2e-2), \
        "mismatch (bf16 / lane-dense path)"

    # 4) Traced theta (parameter under jit) -> SMEM-scalar path.
    f = jax.jit(lambda tt, th: clayton_phi_forward(tt, th))
    out4 = jax.block_until_ready(f(t, jnp.float32(2.0)))
    assert jnp.allclose(out4, ref, rtol=1e-5, atol=1e-6), "mismatch (traced theta)"

    print("KERNEL_OK")
</pallas_src>

<mosaic_0001>
module attributes {stable_mosaic.version = 11 : i64} {
  func.func @kernel(%arg0: i32, %arg1: i32, %arg2: memref<8x128xf32, #tpu.memory_space<vmem>>, %arg3: memref<8x128xf32, #tpu.memory_space<vmem>>) attributes {dimension_semantics = [#tpu.dimension_semantics<parallel>, #tpu.dimension_semantics<parallel>], iteration_bounds = array<i64: 2, 1>, scalar_prefetch = 0 : i64, scratch_operands = 0 : i64, tpu.core_type = #tpu.core_type<tc>, window_params = [{transform_indices = @transform_0, window_bounds = array<i64: 8, 128>}, {transform_indices = @transform_1, window_bounds = array<i64: 8, 128>}]} {
    %c0 = arith.constant 0 : index
    %c0_0 = arith.constant 0 : index
    %0 = vector.load %arg2[%c0, %c0_0] : memref<8x128xf32, #tpu.memory_space<vmem>>, vector<8x128xf32>
    %cst = arith.constant 1.000000e+00 : f32
    %1 = vector.broadcast %cst : f32 to vector<8x128xf32>
    %2 = arith.addf %1, %0 : vector<8x128xf32>
    %3 = math.rsqrt %2 : vector<8x128xf32>
    %c0_1 = arith.constant 0 : index
    %c0_2 = arith.constant 0 : index
    %4 = vector.load %arg3[%c0_1, %c0_2] : memref<8x128xf32, #tpu.memory_space<vmem>>, vector<8x128xf32>
    tpu.vector_store %arg3[%c0_1, %c0_2], %3 {strides = array<i32>} : memref<8x128xf32, #tpu.memory_space<vmem>>, vector<8x128xf32>,
    return
  }
  func.func @transform_0(%arg0: i32, %arg1: i32) -> (i32, i32) {
    %c0_i32 = arith.constant 0 : i32
    return %arg0, %arg1 : i32, i32
  }
  func.func @transform_1(%arg0: i32, %arg1: i32) -> (i32, i32) {
    %c0_i32 = arith.constant 0 : i32
    return %arg0, %arg1 : i32, i32
  }
}

</mosaic_0001>

<bundles_post_ra>
// kernel: tpu_custom_call.1
= control target key start
LH: loop header
LB: loop body
LE: loop exit
PB: predicated region body
PF: predicated region fallthrough
CT: control target
= control target key end

     0   :  { %6 = vsyncpa [#allocation3], 0  ;;  %s582_s0 = inlined_call_operand.hbm [shape: f32[16,128], index: 0, kind: input, shape index: {}]   ;;  %s583_s1 = inlined_call_operand.hbm [shape: f32[16,128], index: 1, kind: output, shape index: {}]  }
   0x1   :  { %8 = vsyncpa [#allocation3 + $0x1], 0 }
   0x2   :  { %9 = vsyncpa [#allocation4], 0 }
   0x3   :  { %11 = vsyncpa [#allocation4 + $0x1], 0  ;;  %s462_s6 = smov 0   ;;  %s464_s7 = smov 0  }
   0x4   :  { %s466_s8 = smov 0   ;;  %s468_s9 = smov 0  }
   0x5   :  { %s470_s10 = smov 0   ;;  %s472_s11 = smov 0  }
   0x6 LB: > { %s261_s12 = sadd.s32 4294967295, %s450_s11   ;;  %s262_s13 = sadd.s32 4294967294, %s450_s11   ;;  %s450_s11 = sphi %s472_s11, %s17_s11   ;;  %s446_s10 = sphi %s470_s10, %s592_s10   ;;  %s442_s9 = sphi %s468_s9, %s591_s9   ;;  %s438_s8 = sphi %s466_s8, %s590_s8   ;;  %s434_s7 = sphi %s464_s7, %s589_s7   ;;  %s430_s6 = sphi %s462_s6, %s588_s6  }
   0x7   : > { %s29_s14 = sadd.s32 1, %s446_s10  ;;  %s38_s15 = sadd.s32 1, %s438_s8 }
   0x8   : > { %p31_p0 = scmp.ge.s32.totalorder %s29_s14, 2  ;;  %p45_p1 = scmp.ne.s32.totalorder %s438_s8, %s434_s7 }
   0x9   : > { %p46_p2 = scmp.eq.s32.totalorder %s450_s11, 0  ;;  %p51_p3 = scmp.ne.s32.totalorder %s434_s7, %s430_s6 }
   0xa   : > { %s594_s14 = smov (%p31_p0, %s29_s14), 0  ;;  %p52_p5 = scmp.eq.s32.totalorder %s261_s12, 0 }
   0xb   : > { %p503_p4 = por %p46_p2, %p45_p1  ;;  %s33_s17 = ssub.s32 %s446_s10, %s594_s14 }
   0xc   : > { %p77_p6 = scmp.eq.s32.totalorder %s261_s12, 1  ;;  %p36_p7 = scmp.eq.s32.totalorder %s33_s17, 0 }
   0xd   : > { %p509_p8 = por %p52_p5, %p51_p3  ;;  %p83_p10 = scmp.eq.s32.totalorder %s262_s13, 1 }
   0xe   : > { %p513_p9 = por %p77_p6, %p45_p1  ;;  %p264_p12 = scmp.ge.s32.totalorder %s450_s11, 2 }
   0xf   : > { %s518_s20 = scalar_select %p36_p7, %s438_s8, %s38_s15  }
  0x10   : > { %p520_p11 = por %p83_p10, %p51_p3  ;;  %p286_p13 = scmp.lt.s32.totalorder %s450_s11, 2 }
  0x11   : > { %s103_s22 = sand.u32 1, %s438_s8   ;;  %s266_s24 = sshll.u32 %s446_s10, 3 }
  0x12   : > { %s265_s23 = sshll.u32 %s103_s22, 3  ;;  %s112_s27 = scalar_lea.hbm %s582_s0, %s266_s24 }
  0x13   : > { %s107_s28 = scalar_lea.vmem [#allocation2], %s265_s23  ;;  %s114_s30 = sshll.u32 %s112_s27, 4  ;;  %s115_s30 = int_to_ptr.hbm [resolvable:$true] %s114_s30 }
  0x14   : > { %s116_s29 = sshll.u32 %s107_s28, 4  ;;  %p279_p0 = pnand %p286_p13, %p503_p4  ;;  %s117_s29 = int_to_ptr.vmem [resolvable:$true] %s116_s29 }
  0x15   : > { %p267_p1 = scmp.ge.s32.totalorder %s450_s11, 1  ;;  %p121_p2 = scmp.lt.s32.totalorder %s450_s11, 3 }
  0x16   : > { %s104_s2 = scalar_lea.sflag [#allocation3], %s103_s22 }
  0x17   : > { %281 = dma.hbm_to_vmem [thread:$0]  (!%p279_p0), %s115_s30, 128, %s117_s29, %s104_s2  }
  0x18   : > { %p122_p3 = pnand %p267_p1, %p121_p2 }
  0x19   : > { %s536_s3 = sand.u32 (!%p122_p3), 1, %s434_s7  }
  0x1a   : > { %125 = sbr.rel (%p122_p3) target bundleno = 56 (0x38), region = 24  ;;  %s268_s4 = sshll.u32 (!%p122_p3), %s536_s3, 3 }
  0x1b   : > { %s128_s5 = scalar_lea.sflag (!%p122_p3), [#allocation3], %s536_s3  ;;  %s131_s12 = scalar_lea.vmem (!%p122_p3), [#allocation2], %s268_s4 }
  0x1f   : > { %421 = dma.done.wait (%p509_p8), %s128_s5, 128  }
  0x20   : > { %423 = vsyncadd (%p509_p8), %s128_s5, 4294967168  ;;  %v151_v0 = vld [vmem:[%s131_s12] sm:$0xff]  ;;  %s271_s13 = sshll.u32 %s442_s9, 3  ;;  %s150_s18 = scalar_lea.vmem [#allocation5], %s268_s4 }
  0x21   : > { %v152_v1 = vadd.f32 1.0, %v151_v0  ;;  %s176_s17 = scalar_lea.hbm %s583_s1, %s271_s13  ;;  %s178_s22 = sshll.u32 %s150_s18, 4  ;;  %s179_s22 = int_to_ptr.vmem [resolvable:$true] %s178_s22 }
  0x22   : > { %s180_s23 = sshll.u32 %s176_s17, 4  ;;  %s165_s9 = scalar_lea.sflag [#allocation4], %s536_s3  ;;  %s181_s23 = int_to_ptr.hbm [resolvable:$true] %s180_s23 }
  0x23   : > { %336 = vrsqrt.f32 %v152_v1  ;;  %vm159_vm0 = vweird.f32 %v152_v1  ;;  %s382_s24 = sshra.s32 %s181_s23, 4  ;;  %s388_s28 = scalar_lea.hbm %s583_s1, 16  ;;  %s383_s24 = int_to_ptr.hbm [resolvable:$true] %s382_s24 }
  0x24   : > { %s384_s25 = scalar_lea.hbm %s383_s24, 8  ;;  %p389_p7 = scmp.lt.s32.totalorder %s383_s24, %s583_s1 }
  0x25   : > { %p385_p4 = scmp.ne.s32.totalorder %s383_s24, %s384_s25  ;;  %p390_p8 = scmp.lt.s32.totalorder %s388_s28, %s384_s25 }
  0x27   : > { %p386_p5 = pnand %p385_p4, %p513_p9  ;;  %p391_p10 = por %p390_p8, %p389_p7 }
  0x29   : > { %v337_v2 = vpop.eup %336  ;;  %p387_p6 = pneg %p386_p5 }
  0x2a   : > { %v154_v3 = vmul.f32 %v337_v2, %v152_v1  ;;  %vm160_vm1 = vweird.f32 %v337_v2 }
  0x2b   : > { %vm161_vm2 = vmor %vm159_vm0, %vm160_vm1  ;;  %p392_p13 = pnand %p391_p10, %p387_p6 }
  0x2c   : > { %v155_v4 = vmul.f32 %v337_v2, %v154_v3 }
  0x2e   : > { %v156_v5 = vmul.f32 0.5, %v155_v4 }
  0x30   : > { %v157_v6 = vsub.f32 1.5, %v156_v5 }
  0x32   : > { %v158_v7 = vmul.f32 %v337_v2, %v157_v6 }
  0x34   : > { %v162_v8 = vsel %vm161_vm2, %v337_v2, %v158_v7 }
  0x35   : > { %163 = vst [vmem:[%s150_s18] sm:$0xff] %v162_v8 }
  0x36   : > { %395 = shalt.err (!%p392_p13)
}
  0x37   : > { %276 = dma.vmem_to_hbm [thread:$0]  (%p513_p9), %s179_s22, 128, %s181_s23, %s165_s9  }
  0x38 PF: > { %s192_s2 = sand.u32 1, %s430_s6   ;;  %p283_p0 = pnand %p264_p12, %p520_p11 }
  0x39   : > { %s193_s3 = scalar_lea.sflag [#allocation4], %s192_s2 }
  0x3a   : > { %p284_p1 = pneg %p283_p0 }
  0x3c   : > { %425 = dma.done.wait (%p284_p1), %s193_s3, 128  }
  0x3d   : > { %427 = vsyncadd (%p284_p1), %s193_s3, 4294967168  ;;  %s17_s11 = sadd.s32 1, %s450_s11   ;;  %s588_s6 = smov %s434_s7 }
  0x3e   : > { %p14_p2 = scmp.ge.s32.totalorder %s17_s11, 4   ;;  %s589_s7 = smov %s438_s8 }
  0x3f   : > { %s590_s8 = smov %s518_s20  ;;  %s591_s9 = smov %s446_s10 }
  0x40   : > { %s592_s10 = smov %s594_s14  ;;  %16 = sbr.rel (!%p14_p2) target bundleno = 6 (0x6), region = 69 }
  0x45   :  { %199 = vsyncpa [#allocation3], 1 }
  0x46   :  { %201 = vsyncpa [#allocation3 + $0x1], 1 }
  0x47   :  { %202 = vsyncpa [#allocation4], 1 }
  0x48   :  { %204 = vsyncpa [#allocation4 + $0x1], 1 }

</bundles_post_ra>
